<compile_context>
chip_gen: v6e
topology: v6e:2x2x1
jax: 0.10.0
libtpu: 0.0.40
codegen_flags: <defaults>
</compile_context>

<pallas_src>
import functools

import jax
import jax.numpy as jnp
from jax import lax
from jax.experimental import pallas as pl
from jax.experimental.pallas import tpu as pltpu

BN_EPS = 1e-5

# Per-buffer budget for one x block. v6e/v5e (128 MiB VMEM) could go larger;
# kept at 8 MiB so the double-buffered pipeline also fits comfortably on v7x.
X_BLOCK_BUDGET_BYTES = 8 << 20
VMEM_LIMIT_BYTES = 40 << 20  # raise v5e's 16 MiB default, stay under v7x's 64 MiB


def _pick_tile_t(T, C, HW, itemsize):
    """Largest divisor of T that keeps one (C, TILE_T, HW) block under budget
    while satisfying the TPU (8, 128) block constraint on the sublane dim."""
    per_t = C * HW * itemsize
    cands = [t for t in range(1, T + 1)
             if T % t == 0 and (t == T or t % 8 == 0)]
    fitting = [t for t in cands if t * per_t <= X_BLOCK_BUDGET_BYTES]
    return max(fitting) if fitting else min(cands)


def _pool_project_kernel(x_ref, w_ref, b_ref, y_ref, stats_ref, *, inv_hw):
    # x_ref:     (1, C, TILE_T, HW)  native-layout tile, HW lane-dense
    # w_ref:     (C, D)              linear weight (torch weight transposed)
    # b_ref:     (1, D)              linear bias
    # y_ref:     (1, TILE_T, D)      projected features
    # stats_ref: (1, 1, 8, D)        row 0 = sum(y), row 1 = sum(y*y), rest 0
    xb = x_ref[0].astype(jnp.float32)                     # (C, TILE_T, HW)

    # spatial mean pooling over H*W (lane axis)
    pooled = jnp.sum(xb, axis=-1) * inv_hw                # (C, TILE_T)

    # linear projection: contract the channel axis of both operands -> (TILE_T, D)
    y = lax.dot_general(
        pooled, w_ref[...].astype(jnp.float32),
        dimension_numbers=(((0,), (0,)), ((), ())),
        preferred_element_type=jnp.float32,
    )
    y = y + b_ref[...]
    y_ref[0] = y.astype(y_ref.dtype)

    # per-tile BatchNorm partial statistics (kept in f32)
    d = y.shape[-1]
    s = jnp.sum(y, axis=0, keepdims=True)                 # (1, D)
    ss = jnp.sum(y * y, axis=0, keepdims=True)            # (1, D)
    stats_ref[0, 0] = jnp.concatenate(
        [s, ss, jnp.zeros((6, d), jnp.float32)], axis=0)  # (8, D)


def _batchnorm_kernel(stats_ref, gamma_ref, beta_ref, y_ref, o_ref, *, inv_n):
    # stats_ref: (B, NT, 8, D) full (tiny), gamma/beta: (1, D)
    # y_ref/o_ref: (1, TILE_T, D)
    st = stats_ref[...]
    s = jnp.sum(st[:, :, 0:1, :], axis=(0, 1))            # (1, D)
    ss = jnp.sum(st[:, :, 1:2, :], axis=(0, 1))           # (1, D)
    mu = s * inv_n
    # NOTE: E[y^2] - mu^2 in f32; fine here (partials are f32, |mu| ~ std).
    var = ss * inv_n - mu * mu
    scale = lax.rsqrt(var + BN_EPS) * gamma_ref[...]      # (1, D)
    shift = beta_ref[...] - mu * scale                    # (1, D)
    o_ref[0] = y_ref[0] * scale + shift


def xdit_feature_processor(x, weight, bias, gamma, beta, *, tile_t=None):
    """x: (B, C, T, H, W). weight: (D, C) torch layout. Returns (B, T, D) f32."""
    B, C, T, H, W = x.shape
    D = weight.shape[0]
    HW = H * W
    N = B * T

    # Metadata-only reshape (last two dims contiguous) — no extra HBM traffic.
    x4 = x.reshape(B, C, T, HW)
    w_k = weight.T.astype(jnp.float32)          # (C, D)
    b_k = bias.reshape(1, D).astype(jnp.float32)
    g_k = gamma.reshape(1, D).astype(jnp.float32)
    bt_k = beta.reshape(1, D).astype(jnp.float32)

    if tile_t is None:
        tile_t = _pick_tile_t(T, C, HW, x4.dtype.itemsize)
    nt = T // tile_t

    x_bytes = x4.size * x4.dtype.itemsize
    y_bytes = N * D * 4
    st_bytes = B * nt * 8 * D * 4

    # ---------- pass 1: stream x once — pool + project + BN partial sums ----------
    cost1 = pl.CostEstimate(
        flops=N * C * HW + 2 * N * C * D,
        transcendentals=0,
        bytes_accessed=x_bytes + y_bytes + st_bytes,
    )
    y, stats = pl.pallas_call(
        functools.partial(_pool_project_kernel, inv_hw=1.0 / HW),
        grid=(B, nt),
        in_specs=[
            pl.BlockSpec((1, C, tile_t, HW), lambda b, t: (b, 0, t, 0)),
            pl.BlockSpec((C, D), lambda b, t: (0, 0)),
            pl.BlockSpec((1, D), lambda b, t: (0, 0)),
        ],
        out_specs=[
            pl.BlockSpec((1, tile_t, D), lambda b, t: (b, t, 0)),
            pl.BlockSpec((1, 1, 8, D), lambda b, t: (b, t, 0, 0)),
        ],
        out_shape=[
            jax.ShapeDtypeStruct((B, T, D), jnp.float32),
            jax.ShapeDtypeStruct((B, nt, 8, D), jnp.float32),
        ],
        compiler_params=pltpu.CompilerParams(
            dimension_semantics=("parallel", "parallel"),
            vmem_limit_bytes=VMEM_LIMIT_BYTES,
        ),
        cost_estimate=cost1,
    )(x4, w_k, b_k)

    # ---------- pass 2: reduce partials -> batch stats, normalize ----------
    cost2 = pl.CostEstimate(
        flops=4 * N * D,
        transcendentals=B * nt * D,
        bytes_accessed=2 * y_bytes + st_bytes,
    )
    out = pl.pallas_call(
        functools.partial(_batchnorm_kernel, inv_n=1.0 / N),
        grid=(B, nt),
        in_specs=[
            pl.BlockSpec((B, nt, 8, D), lambda b, t: (0, 0, 0, 0)),
            pl.BlockSpec((1, D), lambda b, t: (0, 0)),
            pl.BlockSpec((1, D), lambda b, t: (0, 0)),
            pl.BlockSpec((1, tile_t, D), lambda b, t: (b, t, 0)),
        ],
        out_specs=pl.BlockSpec((1, tile_t, D), lambda b, t: (b, t, 0)),
        out_shape=jax.ShapeDtypeStruct((B, T, D), jnp.float32),
        compiler_params=pltpu.CompilerParams(
            dimension_semantics=("parallel", "parallel"),
            vmem_limit_bytes=VMEM_LIMIT_BYTES,
        ),
        cost_estimate=cost2,
    )(stats, g_k, bt_k, y)

    return out


def init_params(key, in_channels, out_dim):
    # Xavier-uniform linear weight (torch layout (out_dim, in_channels)), zero bias,
    # BatchNorm1d fresh init: gamma=1, beta=0.
    bound = (6.0 / (in_channels + out_dim)) ** 0.5
    weight = jax.random.uniform(key, (out_dim, in_channels), jnp.float32,
                                minval=-bound, maxval=bound)
    bias = jnp.zeros((out_dim,), jnp.float32)
    gamma = jnp.ones((out_dim,), jnp.float32)
    beta = jnp.zeros((out_dim,), jnp.float32)
    return weight, bias, gamma, beta


if __name__ == "__main__":
    B, C, T, H, W = 2, 4, 8, 16, 16
    D = 32

    key = jax.random.PRNGKey(0)
    kx, kw = jax.random.split(key)

    x = jax.random.normal(kx, (B, C, T, H, W), jnp.float32)
    weight, bias, gamma, beta = init_params(kw, C, D)

    out = xdit_feature_processor(x, weight, bias, gamma, beta)
    out = jax.block_until_ready(out)

    # lightweight plain-JAX reference
    pooled = x.mean(axis=(3, 4)).transpose(0, 2, 1).reshape(B * T, C)
    y_ref = pooled @ weight.T + bias
    mu = y_ref.mean(axis=0, keepdims=True)
    var = ((y_ref - mu) ** 2).mean(axis=0, keepdims=True)
    ref = ((y_ref - mu) / jnp.sqrt(var + BN_EPS) * gamma + beta).reshape(B, T, D)

    assert out.shape == (B, T, D)
    assert jnp.allclose(out, ref, atol=1e-4, rtol=1e-4), "mismatch vs reference"
    print("KERNEL_OK")
</pallas_src>

<mosaic_0001>
module attributes {stable_mosaic.version = 11 : i64} {
  func.func @_pool_project_kernel(%arg0: i32, %arg1: i32, %arg2: memref<1x4x8x256xf32, #tpu.memory_space<vmem>>, %arg3: memref<4x32xf32, #tpu.memory_space<vmem>>, %arg4: memref<1x32xf32, #tpu.memory_space<vmem>>, %arg5: memref<1x8x32xf32, #tpu.memory_space<vmem>>, %arg6: memref<1x1x8x32xf32, #tpu.memory_space<vmem>>) attributes {dimension_semantics = [#tpu.dimension_semantics<parallel>, #tpu.dimension_semantics<parallel>], iteration_bounds = array<i64: 2, 1>, scalar_prefetch = 0 : i64, scratch_operands = 0 : i64, tpu.core_type = #tpu.core_type<tc>, window_params = [{transform_indices = @transform_0, window_bounds = array<i64: 1, 4, 8, 256>}, {pipeline_mode = #tpu.pipeline_mode<synchronous>, transform_indices = @transform_1, window_bounds = array<i64: 4, 32>}, {pipeline_mode = #tpu.pipeline_mode<synchronous>, transform_indices = @transform_2, window_bounds = array<i64: 1, 32>}, {transform_indices = @transform_3, window_bounds = array<i64: 1, 8, 32>}, {transform_indices = @transform_4, window_bounds = array<i64: 1, 1, 8, 32>}]} {
    %c0 = arith.constant 0 : index
    %c0_0 = arith.constant 0 : index
    %c0_1 = arith.constant 0 : index
    %c0_2 = arith.constant 0 : index
    %0 = vector.load %arg2[%c0, %c0_0, %c0_1, %c0_2] : memref<1x4x8x256xf32, #tpu.memory_space<vmem>>, vector<1x4x8x256xf32>
    %1 = vector.shape_cast %0 : vector<1x4x8x256xf32> to vector<4x8x256xf32>
    %cst = arith.constant dense<0.000000e+00> : vector<4x8xf32>
    %2 = vector.multi_reduction <add>, %1, %cst [2] : vector<4x8x256xf32> to vector<4x8xf32>
    %cst_3 = arith.constant 3.906250e-03 : f32
    %3 = vector.broadcast %cst_3 : f32 to vector<4x8xf32>
    %4 = arith.mulf %2, %3 : vector<4x8xf32>
    %c0_4 = arith.constant 0 : index
    %c0_5 = arith.constant 0 : index
    %5 = vector.load %arg3[%c0_4, %c0_5] : memref<4x32xf32, #tpu.memory_space<vmem>>, vector<4x32xf32>
    %cst_6 = arith.constant dense<0.000000e+00> : vector<8x32xf32>
    %6 = tpu.matmul %4, %5, %cst_6 {dimension_numbers = #tpu.dot_dimension_numbers<[0], [0], [1], [1], [0, 1, 1, 1], [], []>} : vector<4x8xf32>, vector<4x32xf32>, vector<8x32xf32> -> vector<8x32xf32>
    %c0_7 = arith.constant 0 : index
    %c0_8 = arith.constant 0 : index
    %7 = vector.load %arg4[%c0_7, %c0_8] : memref<1x32xf32, #tpu.memory_space<vmem>>, vector<1x32xf32>
    %8 = vector.broadcast %7 : vector<1x32xf32> to vector<8x32xf32>
    %9 = arith.addf %6, %8 : vector<8x32xf32>
    %c0_9 = arith.constant 0 : index
    %c0_10 = arith.constant 0 : index
    %c0_11 = arith.constant 0 : index
    %10 = vector.load %arg5[%c0_9, %c0_10, %c0_11] : memref<1x8x32xf32, #tpu.memory_space<vmem>>, vector<1x8x32xf32>
    %11 = vector.shape_cast %10 : vector<1x8x32xf32> to vector<8x32xf32>
    %12 = vector.shape_cast %9 : vector<8x32xf32> to vector<1x8x32xf32>
    tpu.vector_store %arg5[%c0_9, %c0_10, %c0_11], %12 {strides = array<i32>} : memref<1x8x32xf32, #tpu.memory_space<vmem>>, vector<1x8x32xf32>,
    %cst_12 = arith.constant dense<0.000000e+00> : vector<32xf32>
    %13 = vector.multi_reduction <add>, %9, %cst_12 [0] : vector<8x32xf32> to vector<32xf32>
    %14 = vector.shape_cast %13 : vector<32xf32> to vector<1x32xf32>
    %15 = arith.mulf %9, %9 : vector<8x32xf32>
    %cst_13 = arith.constant dense<0.000000e+00> : vector<32xf32>
    %16 = vector.multi_reduction <add>, %15, %cst_13 [0] : vector<8x32xf32> to vector<32xf32>
    %17 = vector.shape_cast %16 : vector<32xf32> to vector<1x32xf32>
    %cst_14 = arith.constant 0.000000e+00 : f32
    %18 = vector.broadcast %cst_14 : f32 to vector<6x32xf32>
    %19 = tpu.concatenate %14, %17, %18 in 0 : vector<1x32xf32>, vector<1x32xf32>, vector<6x32xf32> -> vector<8x32xf32>
    %c0_15 = arith.constant 0 : index
    %c0_16 = arith.constant 0 : index
    %c0_17 = arith.constant 0 : index
    %c0_18 = arith.constant 0 : index
    %20 = vector.load %arg6[%c0_15, %c0_16, %c0_17, %c0_18] : memref<1x1x8x32xf32, #tpu.memory_space<vmem>>, vector<1x1x8x32xf32>
    %21 = vector.shape_cast %20 : vector<1x1x8x32xf32> to vector<8x32xf32>
    %22 = vector.shape_cast %19 : vector<8x32xf32> to vector<1x1x8x32xf32>
    tpu.vector_store %arg6[%c0_15, %c0_16, %c0_17, %c0_18], %22 {strides = array<i32>} : memref<1x1x8x32xf32, #tpu.memory_space<vmem>>, vector<1x1x8x32xf32>,
    return
  }
  func.func @transform_0(%arg0: i32, %arg1: i32) -> (i32, i32, i32, i32) {
    %c0_i32 = arith.constant 0 : i32
    %c0_i32_0 = arith.constant 0 : i32
    %c0_i32_1 = arith.constant 0 : i32
    return %arg0, %c0_i32, %arg1, %c0_i32_0 : i32, i32, i32, i32
  }
  func.func @transform_1(%arg0: i32, %arg1: i32) -> (i32, i32) {
    %c0_i32 = arith.constant 0 : i32
    %c0_i32_0 = arith.constant 0 : i32
    %c0_i32_1 = arith.constant 0 : i32
    return %c0_i32, %c0_i32_0 : i32, i32
  }
  func.func @transform_2(%arg0: i32, %arg1: i32) -> (i32, i32) {
    %c0_i32 = arith.constant 0 : i32
    %c0_i32_0 = arith.constant 0 : i32
    %c0_i32_1 = arith.constant 0 : i32
    return %c0_i32, %c0_i32_0 : i32, i32
  }
  func.func @transform_3(%arg0: i32, %arg1: i32) -> (i32, i32, i32) {
    %c0_i32 = arith.constant 0 : i32
    %c0_i32_0 = arith.constant 0 : i32
    return %arg0, %arg1, %c0_i32 : i32, i32, i32
  }
  func.func @transform_4(%arg0: i32, %arg1: i32) -> (i32, i32, i32, i32) {
    %c0_i32 = arith.constant 0 : i32
    %c0_i32_0 = arith.constant 0 : i32
    %c0_i32_1 = arith.constant 0 : i32
    return %arg0, %arg1, %c0_i32, %c0_i32_0 : i32, i32, i32, i32
  }
}

</mosaic_0001>

<bundles_post_ra>
// kernel: tpu_custom_call.1
= control target key start
LH: loop header
LB: loop body
LE: loop exit
PB: predicated region body
PF: predicated region fallthrough
CT: control target
= control target key end

     0   :  { %s1140_s0 = inlined_call_operand.hbm [shape: f32[2,4,8,256], index: 0, kind: input, shape index: {}]   ;;  %s1141_s1 = inlined_call_operand.hbm [shape: f32[4,32], index: 1, kind: input, shape index: {}]   ;;  %s1142_s2 = inlined_call_operand.vmem [shape: f32[1,32], index: 2, kind: input, shape index: {}]   ;;  %s1143_s3 = inlined_call_operand.hbm [shape: f32[2,8,32], index: 3, kind: output, shape index: {0}]   ;;  %s1144_s4 = inlined_call_operand.hbm [shape: f32[2,1,8,32], index: 4, kind: output, shape index: {1}]  }
   0x1   :  { %1148 = sst [smem:[#allocation15_spill]] %s1141_s1 }
   0x2   :  { %10 = vsyncpa [#allocation3], 0 }
   0x3   :  { %12 = vsyncpa [#allocation3 + $0x1], 0 }
   0x4   :  { %13 = vsyncpa [#allocation6], 0 }
   0x5   :  { %14 = vsyncpa [#allocation4], 0 }
   0x6   :  { %16 = vsyncpa [#allocation4 + $0x1], 0 }
   0x7   :  { %17 = vsyncpa [#allocation9], 0 }
   0x8   :  { %19 = vsyncpa [#allocation9 + $0x1], 0  ;;  %s927_s15 = smov 0   ;;  %s929_s16 = smov 0  }
   0x9   :  { %s931_s17 = smov 0   ;;  %s933_s18 = smov 0  }
   0xa   :  { %s935_s19 = smov 0   ;;  %s937_s20 = smov 0  }
   0xb LB: > { %s612_s21 = sadd.s32 4294967295, %s892_s20   ;;  %s613_s22 = sadd.s32 4294967294, %s892_s20   ;;  %s892_s20 = sphi %s937_s20, %s25_s20   ;;  %s888_s19 = sphi %s935_s19, %s1168_s19   ;;  %s884_s18 = sphi %s933_s18, %s1167_s18   ;;  %s880_s17 = sphi %s931_s17, %s1166_s17   ;;  %s876_s16 = sphi %s929_s16, %s1165_s16   ;;  %s872_s15 = sphi %s927_s15, %s1164_s15  }
   0xc   : > { %s46_s23 = sadd.s32 1, %s880_s17  ;;  %p53_p0 = scmp.ne.s32.totalorder %s880_s17, %s876_s16 }
   0xd   : > { %p54_p1 = scmp.eq.s32.totalorder %s892_s20, 0  ;;  %p59_p2 = scmp.ne.s32.totalorder %s876_s16, %s872_s15 }
   0xe   : > { %p965_p3 = scmp.eq.s32.totalorder %s612_s21, 0  ;;  %p127_p4 = scmp.eq.s32.totalorder %s612_s21, 1 }
   0xf   : > { %p969_p5 = por %p54_p1, %p53_p0  ;;  %p133_p6 = scmp.eq.s32.totalorder %s613_s22, 1 }
  0x10   : > { %p975_p7 = por %p965_p3, %p59_p2  ;;  %p979_p8 = por %p127_p4, %p53_p0 }
  0x11   : > { %p983_p9 = por %p133_p6, %p59_p2  ;;  %p614_p10 = scmp.ge.s32.totalorder %s892_s20, 1 }
  0x12   : > { %s1151_s26 = scalar_select %p975_p7, 1, 0 }
  0x13   : > { %s1152_s27 = scalar_select %p979_p8, 1, 0 }
  0x14   : > { %s1153_s28 = scalar_select %p983_p9, 1, 0 }
  0x15   : > { %p168_p11 = scmp.lt.s32.totalorder %s892_s20, 3  ;;  %s894_s30 = smov [#allocation5]  }
  0x16   : > { %s181_s5 = sshll.u32 %s894_s30, 4  ;;  %p668_p1 = scmp.lt.s32.totalorder %s892_s20, 2  ;;  %s182_s5 = int_to_ptr.vmem [resolvable:$true] %s181_s5 }
  0x17   : > { %p990_p13 = pnand %p614_p10, %p168_p11  ;;  %s37_s8 = sadd.s32 1, %s888_s19 }
  0x18   : > { %p999_p4 = pnand %p668_p1, %p969_p5  ;;  %p39_p6 = scmp.ge.s32.totalorder %s37_s8, 2 }
  0x19   : > { %p652_p0 = pneg %p990_p13  ;;  %s195_s9 = sand.u32 1, %s880_s17  }
  0x1a   : > { %s735_s10 = scalar_lea.vmem %s182_s5, 64  ;;  %p743_p8 = scmp.lt.s32.totalorder %s182_s5, %s182_s5 }
  0x1b   : > { %p1005_p2 = pnand %p652_p0, %p965_p3  ;;  %p736_p11 = scmp.ne.s32.totalorder %s182_s5, %s735_s10 }
  0x1c   : > { %p744_p5 = scmp.lt.s32.totalorder %s735_s10, %s735_s10 }
  0x1d   : > { %p726_p10 = pneg %p1005_p2 }
  0x1e   : > { %p745_p1 = por %p744_p5, %p743_p8 }
  0x1f   : > { %p738_p12 = pnand %p736_p11, %p726_p10 }
  0x21   : > { %p739_p9 = pneg %p738_p12 }
  0x23   : > { %p746_p7 = pnand %p745_p1, %p739_p9 }
  0x25   : > { %749 = shalt.err (!%p746_p7)
}
  0x26   : > { %s1157_s1 = sld [smem:[#allocation15_spill]]  ;;  %s1170_s8 = smov (%p39_p6, %s37_s8), 0 }
  0x27   : > { %1158 = sst [smem:[#allocation14_spill]] %s1170_s8  ;;  %s617_s13 = sshll.u32 %s195_s9, 6 }
  0x28   : > { %s41_s14 = ssub.s32 %s888_s19, %s1170_s8  ;;  %s634_s21 = sshll.u32 %s888_s19, 10 }
  0x29   : > { %p44_p12 = scmp.eq.s32.totalorder %s41_s14, 0  ;;  %s207_s30 = scalar_lea.hbm %s1140_s0, %s634_s21 }
  0x2a   : > { %s199_s7 = scalar_lea.vmem [#allocation2], %s617_s13  ;;  %s196_s12 = scalar_lea.sflag [#allocation3], %s195_s9 }
  0x2b   : > { %s208_s10 = sshll.u32 %s199_s7, 4  ;;  %p752_p7 = pneg %p999_p4  ;;  %s209_s10 = int_to_ptr.vmem [resolvable:$true] %s208_s10 }
  0x2c   : > { %655 = dma.hbm_to_vmem [thread:$0]  (!%p1005_p2), %s1157_s1, 64, %s182_s5, [#allocation6]  }
  0x2d   : > { %s1029_s11 = scalar_select %p44_p12, %s880_s17, %s46_s23  }
  0x2e   : > { %s763_s5 = scalar_lea.vmem %s209_s10, 1024  ;;  %s895_s1 = smov [#allocation2]  }
  0x2f   : > { %p764_p8 = scmp.ne.s32.totalorder %s209_s10, %s763_s5  ;;  %s768_s14 = sshll.u32 %s895_s1, 4  ;;  %s769_s14 = int_to_ptr.vmem [resolvable:$false] %s768_s14 }
  0x30   : > { %s770_s8 = scalar_lea.vmem %s769_s14, 2048  ;;  %p771_p2 = scmp.lt.s32.totalorder %s209_s10, %s769_s14 }
  0x31   : > { %p766_p9 = pnand %p764_p8, %p752_p7  ;;  %p772_p6 = scmp.lt.s32.totalorder %s770_s8, %s763_s5 }
  0x33   : > { %p767_p0 = pneg %p766_p9  ;;  %p773_p10 = por %p772_p6, %p771_p2 }
  0x35   : > { %p774_p11 = pnand %p773_p10, %p767_p0 }
  0x37   : > { %777 = shalt.err (!%p774_p11)
}
  0x38   : > { %s896_s13 = smov 256   ;;  %s897_s23 = smov 16  }
  0x39   : > { %659 = dma.hbm_to_vmem [thread:$0]  (!%p999_p4), %s207_s30, 1024, %s209_s10, %s196_s12, %s896_s13, %s896_s13, %s897_s23  }
  0x3a   : > { %220 = sbr.rel (%p990_p13) target bundleno = 579 (0x243), region = 32  ;;  %s1038_s9 = sand.u32 (!%p990_p13), 1, %s876_s16  }
  0x3b   : > { %s621_s1 = sshll.u32 (!%p990_p13), %s1038_s9, 6  ;;  %s223_s21 = scalar_lea.sflag (!%p990_p13), [#allocation3], %s1038_s9 }
  0x3c   : > { %s226_s8 = scalar_lea.vmem (!%p990_p13), [#allocation2], %s621_s1  ;;  %p1159_p5 = scmp.ne.s32.totalorder (!%p990_p13), %s1151_s26, 0 }
  0x3f   : > { %855 = dma.done.wait (%p1159_p5), %s223_s21, 1024  }
  0x40   : > { %857 = vsyncadd (%p1159_p5), %s223_s21, 4294966272 }
  0x41   : > { %859 = dma.done.wait (%p965_p3), [#allocation6], 64  }
  0x42   : > { %861 = vsyncadd (%p965_p3), [#allocation6], 4294967232  ;;  %v260_v0 = vld [vmem:[%s226_s8] sm:$0xff]  ;;  %v261_v1 = vld [vmem:[%s226_s8 + $0x8] sm:$0xff]  ;;  %vm357_vm0 = vcmask 1043456   ;;  %v898_v13 = vmov 0.0   ;;  %v296_v14 = vlaneseq }
  0x43   : > { %v264_v2 = vld [vmem:[%s226_s8 + $0x20] sm:$0xff]  ;;  %v268_v3 = vadd.f32 %v261_v1, %v260_v0  ;;  %v265_v4 = vld [vmem:[%s226_s8 + $0x28] sm:$0xff]  ;;  %v262_v5 = vld [vmem:[%s226_s8 + $0x10] sm:$0xff]  ;;  %637 = vmatprep.subr.mxu0 %v898_v13  ;;  %vm899_vm1 = vmmov 0   ;;  %vm314_vm2 = vcmask 1041409   ;;  %vm316_vm3 = vcmask 1042434  }
  0x44   : > { %v263_v6 = vld [vmem:[%s226_s8 + $0x18] sm:$0xff]  ;;  %v274_v7 = vadd.f32 %v265_v4, %v264_v2  ;;  %v266_v8 = vld [vmem:[%s226_s8 + $0x30] sm:$0xff]  ;;  %v284_v12 = vld [vmem:[#allocation5] sm:$0xf]  ;;  %639 = vmatprep.mubr.msk.f32.mxu0 %vm899_vm1, %v898_v13  ;;  %v297_v15 = vand.u32 127, %v296_v14  ;;  %v299_v16 = vshrl.u32 %v296_v14, 7 }
  0x45   : > { %v267_v9 = vld [vmem:[%s226_s8 + $0x38] sm:$0xff]  ;;  %269 = vadd.xlane.f32.xlu0 %v268_v3  ;;  %v271_v10 = vadd.f32 %v263_v6, %v262_v5  ;;  %638 = vmatpush3.msk.msra.mxu0 %vm357_vm0, %v284_v12  ;;  %vm318_vm4 = vcmask 1043459   ;;  %vm353_vm5 = vcmask 31744   ;;  %s623_s24 = sshll.u32 %s1038_s9, 3  ;;  %v625_v34 = vld [vmem:[%s1142_s2] ss:$0 sm:$0xff] }
  0x46   : > { %275 = vadd.xlane.f32.xlu1 %v274_v7  ;;  %v277_v11 = vadd.f32 %v267_v9, %v266_v8  ;;  %v300_v19 = vsub.s32 %v297_v15, %v299_v16  ;;  %s630_s6 = sshll.u32 %s884_s18, 7  ;;  %s252_s22 = scalar_lea.vmem [#allocation7], %s623_s24  ;;  %vm431_vm6 = vcmask 261120  }
  0x47   : > { %s473_s25 = sshll.u32 %s252_s22, 4  ;;  %s1062_s10 = scalar_lea.hbm %s1143_s3, %s630_s6  ;;  %s1064_s25 = int_to_ptr.vmem [resolvable:$true] %s473_s25 }
  0x48   : > { %s454_s12 = scalar_lea.sflag [#allocation4], %s1038_s9  ;;  %s778_s5 = scalar_lea.vmem %s1064_s25, 128 }
  0x49   : > { %272 = vadd.xlane.f32.xlu0 %v271_v10  ;;  %p779_p3 = scmp.ne.s32.totalorder %s1064_s25, %s778_s5  ;;  %p1160_p13 = scmp.ne.s32.totalorder %s1152_s27, 0 }
  0x4a   : > { %278 = vadd.xlane.f32.xlu1 %v277_v11  ;;  %s900_s14 = smov [#allocation7]  }
  0x4b   : > { %p780_p4 = pnand %p779_p3, %p1160_p13  ;;  %s782_s13 = sshll.u32 %s900_s14, 4  ;;  %s783_s13 = int_to_ptr.vmem [resolvable:$false] %s782_s13 }
  0x4c   : > { %s784_s23 = scalar_lea.vmem %s783_s13, 256  ;;  %p785_p12 = scmp.lt.s32.totalorder %s1064_s25, %s783_s13 }
  0x4d   : > { %p781_p1 = pneg %p780_p4  ;;  %p786_p7 = scmp.lt.s32.totalorder %s784_s23, %s778_s5 }
  0x4f   : > { %p787_p8 = por %p786_p7, %p785_p12 }
  0x51   : > { %p788_p9 = pnand %p787_p8, %p781_p1 }
  0xce   : > { %v270_v17 = vpop.xlane.xlu0 %269 }
  0xcf   : > { %v276_v18 = vpop.xlane.xlu1 %275  ;;  %v280_v20 = vmul.f32 0.00390625, %v270_v17 }
  0xd0   : > { %v282_v21 = vmul.f32 0.00390625, %v276_v18 }
  0xd1   : > { %v301_v26 = vrot.slane %v280_v20, %v300_v19 }
  0xd2   : > { %v273_v22 = vpop.xlane.xlu0 %272  ;;  %v309_v28 = vrot.slane %v282_v21, %v300_v19 }
  0xd3   : > { %v281_v23 = vmul.f32 0.00390625, %v273_v22  ;;  %v279_v24 = vpop.xlane.xlu1 %278 }
  0xd4   : > { %v283_v25 = vmul.f32 0.00390625, %v279_v24 }
  0xd5   : > { %v305_v27 = vrot.slane %v281_v23, %v300_v19 }
  0xd6   : > { %v313_v29 = vrot.slane %v283_v25, %v300_v19 }
  0xd7   : > { %v315_v30 = vsel %vm314_vm2, %v305_v27, %v301_v26 }
  0xd8   : > { %v317_v31 = vsel %vm316_vm3, %v309_v28, %v315_v30 }
  0xd9   : > { %v319_v32 = vsel %vm318_vm4, %v313_v29, %v317_v31 }
  0xda   : > { %321 = vxpose.xlu0.b32.start.end [1/1] (short) (narrow) %v319_v32, 8 }
 0x156   : > { %v337_v33 = vpop.trf.xlu0 }
 0x157   : > { %640 = vmatmul.mubr.msk.f32.vlgmr.msra.gmra.mxu0 %vm353_vm5, %v337_v33 }
 0x217   : > { %v427_v35 = vpop.f32.mrf.mxu0 }
 0x218   : > { %v428_v36 = vadd.f32 %v625_v34, %v427_v35 }
 0x219   : > { %v641_v37 = vpop.f32.mrf.mxu0 }
 0x21a   : > { %v433_v38 = vsel %vm431_vm6, %v428_v36, 0.0  ;;  %v440_v39 = vmul.f32 %v428_v36, %v428_v36  ;;  %432 = vst.msk [vmem:[%s252_s22] sm:$0xff] %vm431_vm6, %v428_v36 }
 0x21b   : > { %v434_v40 = vrot.slane %v433_v38, 4 }
 0x21c   : > { %791 = shalt.err (!%p788_p9)
}
 0x21d   : > { %s792_s1 = scalar_lea.hbm %s1062_s10, 128  ;;  %s796_s26 = scalar_lea.hbm %s1143_s3, 256 }
 0x21e   : > { %p793_p0 = scmp.ne.s32.totalorder %s1062_s10, %s792_s1  ;;  %p797_p10 = scmp.lt.s32.totalorder %s1062_s10, %s1143_s3 }
 0x21f   : > { %p798_p11 = scmp.lt.s32.totalorder %s796_s26, %s792_s1 }
 0x220   : > { %p794_p2 = pnand %p793_p0, %p1160_p13 }
 0x221   : > { %p799_p5 = por %p798_p11, %p797_p10 }
 0x222   : > { %p795_p6 = pneg %p794_p2 }
 0x224   : > { %p800_p3 = pnand %p799_p5, %p795_p6 }
 0x226   : > { %803 = shalt.err (!%p800_p3)
}
 0x227   : > { %648 = dma.vmem_to_hbm [thread:$0]  (%p1160_p13), %s1064_s25, 128, %s1062_s10, %s454_s12   ;;  %v441_v41 = vsel %vm431_vm6, %v440_v39, 0.0  ;;  %v435_v42 = vadd.f32 %v434_v40, %v433_v38  ;;  %vm448_vm7 = vcmask 1040384   ;;  %vm450_vm8 = vcmask 1041408  }
 0x228   : > { %v442_v43 = vrot.slane %v441_v41, 4  ;;  %s259_s30 = scalar_lea.vmem [#allocation8], %s623_s24  ;;  %s1097_s12 = scalar_lea.hbm %s1144_s4, %s630_s6 }
 0x229   : > { %v436_v44 = vrot.slane %v435_v42, 2  ;;  %s487_s7 = sshll.u32 %s259_s30, 4  ;;  %s459_s5 = scalar_lea.sflag [#allocation9], %s1038_s9  ;;  %s488_s7 = int_to_ptr.vmem [resolvable:$true] %s487_s7 }
 0x22a   : > { %v443_v45 = vadd.f32 %v442_v43, %v441_v41  ;;  %s804_s14 = scalar_lea.vmem %s488_s7, 128  ;;  %s901_s24 = smov [#allocation8]  }
 0x22b   : > { %v437_v46 = vadd.f32 %v436_v44, %v435_v42  ;;  %p805_p4 = scmp.ne.s32.totalorder %s488_s7, %s804_s14  ;;  %s808_s13 = sshll.u32 %s901_s24, 4  ;;  %s809_s13 = int_to_ptr.vmem [resolvable:$false] %s808_s13 }
 0x22c   : > { %v444_v47 = vrot.slane %v443_v45, 2  ;;  %s810_s23 = scalar_lea.vmem %s809_s13, 256  ;;  %p811_p7 = scmp.lt.s32.totalorder %s488_s7, %s809_s13 }
 0x22d   : > { %v438_v48 = vrot.slane %v437_v46, 1  ;;  %p806_p1 = pnand %p805_p4, %p1160_p13  ;;  %p812_p8 = scmp.lt.s32.totalorder %s810_s23, %s804_s14 }
 0x22e   : > { %v445_v49 = vadd.f32 %v444_v47, %v443_v45 }
 0x22f   : > { %v439_v51 = vadd.f32 %v438_v48, %v437_v46  ;;  %p807_p12 = pneg %p806_p1  ;;  %p813_p9 = por %p812_p8, %p811_p7 }
 0x230   : > { %v446_v50 = vrot.slane %v445_v49, 1 }
 0x231   : > { %p814_p0 = pnand %p813_p9, %p807_p12 }
 0x232   : > { %v447_v52 = vadd.f32 %v446_v50, %v445_v49 }
 0x234   : > { %v449_v53 = vsel %vm448_vm7, %v439_v51, %v447_v52 }
 0x235   : > { %v451_v54 = vsel %vm450_vm8, %v449_v53, 0.0 }
 0x236   : > { %452 = vst.msk [vmem:[%s259_s30] sm:$0xff] %vm431_vm6, %v451_v54 }
 0x237   : > { %817 = shalt.err (!%p814_p0)
}
 0x238   : > { %s818_s18 = scalar_lea.hbm %s1097_s12, 128  ;;  %s822_s1 = scalar_lea.hbm %s1144_s4, 256 }
 0x239   : > { %p819_p2 = scmp.ne.s32.totalorder %s1097_s12, %s818_s18  ;;  %p823_p11 = scmp.lt.s32.totalorder %s1097_s12, %s1144_s4 }
 0x23a   : > { %p824_p5 = scmp.lt.s32.totalorder %s822_s1, %s818_s18 }
 0x23b   : > { %p820_p6 = pnand %p819_p2, %p1160_p13 }
 0x23c   : > { %p825_p3 = por %p824_p5, %p823_p11 }
 0x23d   : > { %p821_p10 = pneg %p820_p6 }
 0x23f   : > { %p826_p4 = pnand %p825_p3, %p821_p10 }
 0x241   : > { %829 = shalt.err (!%p826_p4)
}
 0x242   : > { %649 = dma.vmem_to_hbm [thread:$0]  (%p1160_p13), %s488_s7, 128, %s1097_s12, %s459_s5  }
 0x243 PF: > { %s499_s26 = sand.u32 1, %s872_s15   ;;  %p1161_p1 = scmp.ne.s32.totalorder %s1153_s28, 0 }
 0x244   : > { %p1162_p12 = scmp.ge.s32.totalorder %s892_s20, 2  ;;  %s500_s29 = scalar_lea.sflag [#allocation4], %s499_s26 }
 0x246   : > { %p661_p7 = pnand %p1162_p12, %p1161_p1 }
 0x248   : > { %p662_p8 = pneg %p661_p7 }
 0x24a   : > { %863 = dma.done.wait (%p662_p8), %s500_s29, 128  }
 0x24b   : > { %865 = vsyncadd (%p662_p8), %s500_s29, 4294967168  ;;  %s509_s22 = scalar_lea.sflag [#allocation9], %s499_s26 }
 0x24c   : > { %867 = dma.done.wait (%p662_p8), %s509_s22, 128  }
 0x24d   : > { %869 = vsyncadd (%p662_p8), %s509_s22, 4294967168  ;;  %s25_s20 = sadd.s32 1, %s892_s20   ;;  %s1163_s27 = sld [smem:[#allocation14_spill]] }
 0x24e   : > { %p22_p9 = scmp.ge.s32.totalorder %s25_s20, 4   ;;  %s1164_s15 = smov %s876_s16 }
 0x24f   : > { %s1165_s16 = smov %s880_s17  ;;  %s1166_s17 = smov %s1029_s11 }
 0x250   : > { %s1167_s18 = smov %s888_s19  ;;  %24 = sbr.rel (!%p22_p9) target bundleno = 11 (0xb), region = 98 }
 0x253   : > { %s1168_s19 = smov %s1163_s27 }
 0x255   :  { %514 = vsyncpa [#allocation3], 1 }
 0x256   :  { %516 = vsyncpa [#allocation3 + $0x1], 1 }
 0x257   :  { %517 = vsyncpa [#allocation6], 1 }
 0x258   :  { %518 = vsyncpa [#allocation4], 1 }
 0x259   :  { %520 = vsyncpa [#allocation4 + $0x1], 1 }
 0x25a   :  { %521 = vsyncpa [#allocation9], 1 }
 0x25b   :  { %523 = vsyncpa [#allocation9 + $0x1], 1 }

</bundles_post_ra>
